<compile_context>
chip_gen: v6e
topology: v6e:2x2x1
jax: 0.10.0
libtpu: 0.0.40
codegen_flags: <defaults>
</compile_context>

<pallas_src>
import functools
from typing import NamedTuple

import jax
import jax.numpy as jnp
from jax.experimental import pallas as pl
from jax.experimental.pallas import tpu as pltpu


def _round_up(x, m):
    return ((x + m - 1) // m) * m


class SkipGramStatic(NamedTuple):
    V: int    # true vocab size
    D: int    # true embedding dim
    Dp: int   # D padded to sublane granularity
    Vp: int   # V padded to a multiple of the vocab tile
    tv: int   # vocab tile (lane-dense, multiple of 128)


# -----------------------------------------------------------------------------
# Kernel: per-(batch-tile, vocab-tile) scores matmul + online log-sum-exp.
# grid = (B//tb, Vp//tv); vocab axis is the reduction axis for the LSE.
# -----------------------------------------------------------------------------
def _skipgram_scores_kernel(tvec_ref,    # VMEM (tb, Dp)  gathered target vectors, batch tile i
                            cembt_ref,   # VMEM (Dp, tv)  context table^T, vocab tile j
                            bias_ref,    # VMEM (1,  tv)  0 on real columns, -inf on vocab padding
                            scores_ref,  # VMEM (tb, tv)  raw scores, streamed out per (i, j)
                            lse_ref,     # VMEM (tb, 1)   per-row log-sum-exp, resident across j
                            m_ref,       # VMEM (tb, 1)   scratch: running max
                            l_ref):      # VMEM (tb, 1)   scratch: running sum(exp)
    j = pl.program_id(1)

    @pl.when(j == 0)
    def _init():
        m_ref[...] = jnp.full(m_ref.shape, -jnp.inf, jnp.float32)
        l_ref[...] = jnp.zeros(l_ref.shape, jnp.float32)

    # (tb, Dp) @ (Dp, tv) on the MXU with f32 accumulation.
    s = jnp.dot(tvec_ref[...], cembt_ref[...],
                preferred_element_type=jnp.float32)
    # Padded vocab columns carry a -inf bias so they never reach the softmax.
    s = s + bias_ref[...]

    # Online (flash-style) log-sum-exp update over vocab tiles.
    m_prev = m_ref[...]
    m_new = jnp.maximum(m_prev, jnp.max(s, axis=-1, keepdims=True))
    l_ref[...] = (jnp.exp(m_prev - m_new) * l_ref[...]
                  + jnp.sum(jnp.exp(s - m_new), axis=-1, keepdims=True))
    m_ref[...] = m_new

    # Stream the raw (biased) scores straight out; log_softmax = s - lse is a
    # trivial elementwise epilogue (fused into the consumer in production).
    scores_ref[...] = s

    @pl.when(j == pl.num_programs(1) - 1)
    def _finalize():
        lse_ref[...] = m_ref[...] + jnp.log(l_ref[...])


# -----------------------------------------------------------------------------
# One-time (per weight update) table packing — hoisted out of the forward.
# -----------------------------------------------------------------------------
def prepare_skipgram_tables(target_emb, context_emb, *,
                            table_dtype=jnp.bfloat16, tv=1024):
    V, D = target_emb.shape
    assert context_emb.shape == (V, D)

    tv = int(min(tv, _round_up(V, 128)))
    tv = _round_up(tv, 128)
    sub = 16 if jnp.dtype(table_dtype).itemsize == 2 else 8
    Dp = _round_up(D, sub)            # contraction dim: sublane pad only (not 128)
    Vp = _round_up(V, tv)             # vocab: lane-dense tiles

    temb = jnp.zeros((V, Dp), table_dtype).at[:, :D].set(
        target_emb.astype(table_dtype))
    cembt = jnp.zeros((Dp, Vp), table_dtype).at[:D, :V].set(
        context_emb.astype(table_dtype).T)
    bias = jnp.full((1, Vp), -jnp.inf, jnp.float32).at[:, :V].set(0.0)

    tables = {"temb": temb, "cembt": cembt, "bias": bias}
    return tables, SkipGramStatic(V=V, D=D, Dp=Dp, Vp=Vp, tv=tv)


# -----------------------------------------------------------------------------
# Forward pass.
# -----------------------------------------------------------------------------
def word2vec_skipgram_forward(tables, target, context=None, *, static, tb=256):
    """log_softmax(target_embedding(target) @ context_embedding.weight.T).

    `context` is accepted for API parity with the PyTorch module but is dead
    with respect to the returned log_probs (as in the reference forward).
    tb default 256 targets v6e/v7x (256-wide MXU); use 128 on v5e.
    """
    del context
    temb, cembt, bias = tables["temb"], tables["cembt"], tables["bias"]
    V, Dp, Vp, tv = static.V, static.Dp, static.Vp, static.tv

    B = target.shape[0]
    ids = target.astype(jnp.int32)
    tvec = jnp.take(temb, ids, axis=0)                 # (B, Dp) row gather in XLA

    tb = int(min(tb, _round_up(B, 8)))
    tb = _round_up(tb, 8)
    Bp = _round_up(B, tb)
    if Bp != B:
        tvec = jnp.zeros((Bp, Dp), tvec.dtype).at[:B].set(tvec)
    n_b, n_v = Bp // tb, Vp // tv

    # VMEM budget: double-buffered input/output tiles + scratch, with headroom,
    # clamped so it stays safe on v7x's 64 MiB physical VMEM.
    itemsize = jnp.dtype(tvec.dtype).itemsize
    vmem_bytes = (2 * (tb * Dp + Dp * tv) * itemsize   # pipelined input tiles
                  + 2 * tv * 4                          # bias tiles
                  + 2 * (tb * tv * 4)                   # streamed scores tiles
                  + 2 * (tb * 4)                        # lse output
                  + 2 * (tb * 4))                       # m/l scratch
    vmem_limit = int(min(max(vmem_bytes + (8 << 20), 32 << 20), 50 << 20))

    scores, lse = pl.pallas_call(
        _skipgram_scores_kernel,
        out_shape=(jax.ShapeDtypeStruct((Bp, Vp), jnp.float32),
                   jax.ShapeDtypeStruct((Bp, 1), jnp.float32)),
        grid_spec=pltpu.PrefetchScalarGridSpec(
            num_scalar_prefetch=0,
            grid=(n_b, n_v),
            in_specs=[
                # Gathered target vectors for this batch tile (loop-invariant in j).
                pl.BlockSpec((tb, Dp), lambda i, j: (i, 0)),
                # Context table^T, streamed (pipelined) along the vocab axis.
                pl.BlockSpec((Dp, tv), lambda i, j: (0, j)),
                # Vocab-padding bias row, streamed with the context tile.
                pl.BlockSpec((1, tv), lambda i, j: (0, j)),
            ],
            out_specs=[
                # Raw scores: streamed, lane-dense 128-multiple tiles.
                pl.BlockSpec((tb, tv), lambda i, j: (i, j)),
                # Per-row LSE: resident across the vocab (reduction) axis.
                pl.BlockSpec((tb, 1), lambda i, j: (i, 0)),
            ],
            scratch_shapes=[
                pltpu.VMEM((tb, 1), jnp.float32),   # running max
                pltpu.VMEM((tb, 1), jnp.float32),   # running sum(exp)
            ],
        ),
        compiler_params=pltpu.CompilerParams(
            dimension_semantics=("parallel", "arbitrary"),
            vmem_limit_bytes=vmem_limit),
    )(tvec, cembt, bias)

    # Trivial elementwise epilogue (XLA fuses the subtract + slice); in
    # production fuse this into the consumer (e.g. the NLL gather) instead.
    return (scores - lse)[:B, :V]


def _reference(target, context, target_emb, context_emb):
    del context
    tvec = target_emb[target]                       # (B, D)
    scores = tvec @ context_emb.T                   # (B, V)
    return jax.nn.log_softmax(scores, axis=-1)


if __name__ == "__main__":
    vocab_size = 300        # not a multiple of 128 -> exercises vocab padding/bias mask
    embedding_dim = 48      # not a multiple of 128 -> exercises sublane-only D padding
    batch = 32

    key = jax.random.PRNGKey(0)
    k_temb, k_cemb, k_tgt, k_ctx = jax.random.split(key, 4)

    # nn.Embedding default init: N(0, 1)
    target_emb = jax.random.normal(k_temb, (vocab_size, embedding_dim), jnp.float32)
    context_emb = jax.random.normal(k_cemb, (vocab_size, embedding_dim), jnp.float32)
    target = jax.random.randint(k_tgt, (batch,), 0, vocab_size, jnp.int32)
    context = jax.random.randint(k_ctx, (batch,), 0, vocab_size, jnp.int32)

    ref = _reference(target, context, target_emb, context_emb)

    # --- f32 tables: exact check against the f32 reference -------------------
    # Small tiles (tb=16, tv=128) purely to exercise a multi-tile (2, 3) grid;
    # production defaults are tb=256 / tv=1024 chosen automatically.
    tables_f32, static_f32 = prepare_skipgram_tables(
        target_emb, context_emb, table_dtype=jnp.float32, tv=128)
    fwd_f32 = jax.jit(functools.partial(word2vec_skipgram_forward,
                                        static=static_f32, tb=16))
    log_probs = jax.block_until_ready(fwd_f32(tables_f32, target, context))
    assert log_probs.shape == (batch, vocab_size)
    assert jnp.allclose(log_probs, ref, atol=1e-4, rtol=1e-4), "f32 mismatch vs reference"

    # --- bf16 tables (production default): check vs bf16-rounded reference ---
    tables_bf16, static_bf16 = prepare_skipgram_tables(
        target_emb, context_emb, table_dtype=jnp.bfloat16, tv=128)
    fwd_bf16 = jax.jit(functools.partial(word2vec_skipgram_forward,
                                         static=static_bf16, tb=16))
    log_probs_bf16 = jax.block_until_ready(fwd_bf16(tables_bf16, target, context))
    ref_bf16 = _reference(target, context,
                          target_emb.astype(jnp.bfloat16).astype(jnp.float32),
                          context_emb.astype(jnp.bfloat16).astype(jnp.float32))
    assert jnp.allclose(log_probs_bf16, ref_bf16, atol=5e-3, rtol=5e-3), \
        "bf16 mismatch vs bf16-rounded reference"

    print("KERNEL_OK")
</pallas_src>

<mosaic_0001>
module attributes {stable_mosaic.version = 11 : i64} {
  func.func @_skipgram_scores_kernel(%arg0: i32, %arg1: i32, %arg2: memref<16x48xf32, #tpu.memory_space<vmem>>, %arg3: memref<48x128xf32, #tpu.memory_space<vmem>>, %arg4: memref<1x128xf32, #tpu.memory_space<vmem>>, %arg5: memref<16x128xf32, #tpu.memory_space<vmem>>, %arg6: memref<16x1xf32, #tpu.memory_space<vmem>>, %arg7: memref<16x1xf32, #tpu.memory_space<vmem>>, %arg8: memref<16x1xf32, #tpu.memory_space<vmem>>) attributes {dimension_semantics = [#tpu.dimension_semantics<parallel>, #tpu.dimension_semantics<arbitrary>], iteration_bounds = array<i64: 2, 3>, scalar_prefetch = 0 : i64, scratch_operands = 2 : i64, tpu.core_type = #tpu.core_type<tc>, window_params = [{transform_indices = @transform_0, window_bounds = array<i64: 16, 48>}, {transform_indices = @transform_1, window_bounds = array<i64: 48, 128>}, {transform_indices = @transform_2, window_bounds = array<i64: 1, 128>}, {transform_indices = @transform_3, window_bounds = array<i64: 16, 128>}, {transform_indices = @transform_4, window_bounds = array<i64: 16, 1>}]} {
    %c0_i32 = arith.constant 0 : i32
    %0 = arith.cmpi eq, %arg1, %c0_i32 : i32
    %1 = arith.extui %0 : i1 to i32
    %c0_i32_0 = arith.constant 0 : i32
    %2 = arith.cmpi ne, %1, %c0_i32_0 : i32
    scf.if %2 {
      %cst_19 = arith.constant 0xFF800000 : f32
      %29 = vector.broadcast %cst_19 : f32 to vector<16x1xf32>
      %c0_20 = arith.constant 0 : index
      %c0_21 = arith.constant 0 : index
      %30 = vector.load %arg7[%c0_20, %c0_21] : memref<16x1xf32, #tpu.memory_space<vmem>>, vector<16x1xf32>
      tpu.vector_store %arg7[%c0_20, %c0_21], %29 {strides = array<i32>} : memref<16x1xf32, #tpu.memory_space<vmem>>, vector<16x1xf32>,
      %cst_22 = arith.constant 0.000000e+00 : f32
      %31 = vector.broadcast %cst_22 : f32 to vector<16x1xf32>
      %c0_23 = arith.constant 0 : index
      %c0_24 = arith.constant 0 : index
      %32 = vector.load %arg8[%c0_23, %c0_24] : memref<16x1xf32, #tpu.memory_space<vmem>>, vector<16x1xf32>
      tpu.vector_store %arg8[%c0_23, %c0_24], %31 {strides = array<i32>} : memref<16x1xf32, #tpu.memory_space<vmem>>, vector<16x1xf32>,
    } else {
    }
    %c0 = arith.constant 0 : index
    %c0_1 = arith.constant 0 : index
    %3 = vector.load %arg2[%c0, %c0_1] : memref<16x48xf32, #tpu.memory_space<vmem>>, vector<16x48xf32>
    %c0_2 = arith.constant 0 : index
    %c0_3 = arith.constant 0 : index
    %4 = vector.load %arg3[%c0_2, %c0_3] : memref<48x128xf32, #tpu.memory_space<vmem>>, vector<48x128xf32>
    %cst = arith.constant dense<0.000000e+00> : vector<16x128xf32>
    %5 = tpu.matmul %3, %4, %cst {dimension_numbers = #tpu.dot_dimension_numbers<[1], [0], [0], [1], [0, 0, 1, 1], [], []>} : vector<16x48xf32>, vector<48x128xf32>, vector<16x128xf32> -> vector<16x128xf32>
    %c0_4 = arith.constant 0 : index
    %c0_5 = arith.constant 0 : index
    %6 = vector.load %arg4[%c0_4, %c0_5] : memref<1x128xf32, #tpu.memory_space<vmem>>, vector<1x128xf32>
    %7 = vector.broadcast %6 : vector<1x128xf32> to vector<16x128xf32>
    %8 = arith.addf %5, %7 : vector<16x128xf32>
    %c0_6 = arith.constant 0 : index
    %c0_7 = arith.constant 0 : index
    %9 = vector.load %arg7[%c0_6, %c0_7] : memref<16x1xf32, #tpu.memory_space<vmem>>, vector<16x1xf32>
    %cst_8 = arith.constant dense<0xFF800000> : vector<16xf32>
    %10 = vector.multi_reduction <maximumf>, %8, %cst_8 [1] : vector<16x128xf32> to vector<16xf32>
    %11 = vector.shape_cast %10 : vector<16xf32> to vector<16x1xf32>
    %12 = arith.maximumf %9, %11 : vector<16x1xf32>
    %13 = arith.subf %9, %12 : vector<16x1xf32>
    %14 = math.exp %13 : vector<16x1xf32>
    %c0_9 = arith.constant 0 : index
    %c0_10 = arith.constant 0 : index
    %15 = vector.load %arg8[%c0_9, %c0_10] : memref<16x1xf32, #tpu.memory_space<vmem>>, vector<16x1xf32>
    %16 = arith.mulf %14, %15 : vector<16x1xf32>
    %17 = vector.broadcast %12 : vector<16x1xf32> to vector<16x128xf32>
    %18 = arith.subf %8, %17 : vector<16x128xf32>
    %19 = math.exp %18 : vector<16x128xf32>
    %cst_11 = arith.constant dense<0.000000e+00> : vector<16xf32>
    %20 = vector.multi_reduction <add>, %19, %cst_11 [1] : vector<16x128xf32> to vector<16xf32>
    %21 = vector.shape_cast %20 : vector<16xf32> to vector<16x1xf32>
    %22 = arith.addf %16, %21 : vector<16x1xf32>
    %c0_12 = arith.constant 0 : index
    %c0_13 = arith.constant 0 : index
    %23 = vector.load %arg8[%c0_12, %c0_13] : memref<16x1xf32, #tpu.memory_space<vmem>>, vector<16x1xf32>
    tpu.vector_store %arg8[%c0_12, %c0_13], %22 {strides = array<i32>} : memref<16x1xf32, #tpu.memory_space<vmem>>, vector<16x1xf32>,
    %c0_14 = arith.constant 0 : index
    %c0_15 = arith.constant 0 : index
    %24 = vector.load %arg7[%c0_14, %c0_15] : memref<16x1xf32, #tpu.memory_space<vmem>>, vector<16x1xf32>
    tpu.vector_store %arg7[%c0_14, %c0_15], %12 {strides = array<i32>} : memref<16x1xf32, #tpu.memory_space<vmem>>, vector<16x1xf32>,
    %c0_16 = arith.constant 0 : index
    %c0_17 = arith.constant 0 : index
    %25 = vector.load %arg5[%c0_16, %c0_17] : memref<16x128xf32, #tpu.memory_space<vmem>>, vector<16x128xf32>
    tpu.vector_store %arg5[%c0_16, %c0_17], %8 {strides = array<i32>} : memref<16x128xf32, #tpu.memory_space<vmem>>, vector<16x128xf32>,
    %c2_i32 = arith.constant 2 : i32
    %26 = arith.cmpi eq, %arg1, %c2_i32 : i32
    %27 = arith.extui %26 : i1 to i32
    %c0_i32_18 = arith.constant 0 : i32
    %28 = arith.cmpi ne, %27, %c0_i32_18 : i32
    scf.if %28 {
      %c0_19 = arith.constant 0 : index
      %c0_20 = arith.constant 0 : index
      %29 = vector.load %arg7[%c0_19, %c0_20] : memref<16x1xf32, #tpu.memory_space<vmem>>, vector<16x1xf32>
      %c0_21 = arith.constant 0 : index
      %c0_22 = arith.constant 0 : index
      %30 = vector.load %arg8[%c0_21, %c0_22] : memref<16x1xf32, #tpu.memory_space<vmem>>, vector<16x1xf32>
      %31 = math.log %30 : vector<16x1xf32>
      %32 = arith.addf %29, %31 : vector<16x1xf32>
      %c0_23 = arith.constant 0 : index
      %c0_24 = arith.constant 0 : index
      %33 = vector.load %arg6[%c0_23, %c0_24] : memref<16x1xf32, #tpu.memory_space<vmem>>, vector<16x1xf32>
      tpu.vector_store %arg6[%c0_23, %c0_24], %32 {strides = array<i32>} : memref<16x1xf32, #tpu.memory_space<vmem>>, vector<16x1xf32>,
    } else {
    }
    return
  }
  func.func @transform_0(%arg0: i32, %arg1: i32) -> (i32, i32) {
    %c0_i32 = arith.constant 0 : i32
    %c0_i32_0 = arith.constant 0 : i32
    return %arg0, %c0_i32 : i32, i32
  }
  func.func @transform_1(%arg0: i32, %arg1: i32) -> (i32, i32) {
    %c0_i32 = arith.constant 0 : i32
    %c0_i32_0 = arith.constant 0 : i32
    return %c0_i32, %arg1 : i32, i32
  }
  func.func @transform_2(%arg0: i32, %arg1: i32) -> (i32, i32) {
    %c0_i32 = arith.constant 0 : i32
    %c0_i32_0 = arith.constant 0 : i32
    return %c0_i32, %arg1 : i32, i32
  }
  func.func @transform_3(%arg0: i32, %arg1: i32) -> (i32, i32) {
    %c0_i32 = arith.constant 0 : i32
    return %arg0, %arg1 : i32, i32
  }
  func.func @transform_4(%arg0: i32, %arg1: i32) -> (i32, i32) {
    %c0_i32 = arith.constant 0 : i32
    %c0_i32_0 = arith.constant 0 : i32
    return %arg0, %c0_i32 : i32, i32
  }
}

</mosaic_0001>

<bundles_post_ra>
// kernel: word2vec_skipgram_forward.1
= control target key start
LH: loop header
LB: loop body
LE: loop exit
PB: predicated region body
PF: predicated region fallthrough
CT: control target
= control target key end

     0   :  { %s1054_s0 = inlined_call_operand.vmem [shape: f32[32,48], index: 0, kind: input, shape index: {}]   ;;  %s1055_s1 = inlined_call_operand.vmem [shape: f32[48,384], index: 1, kind: input, shape index: {}]   ;;  %s1056_s2 = inlined_call_operand.vmem [shape: f32[1,384], index: 2, kind: input, shape index: {}]   ;;  %s1057_s3 = inlined_call_operand.vmem [shape: f32[32,384], index: 3, kind: output, shape index: {0}]   ;;  %s1058_s4 = inlined_call_operand.vmem [shape: f32[32,1], index: 4, kind: output, shape index: {1}]  }
   0x1   :  { %1060 = sst [smem:[#allocation7_spill]] %s1055_s1 }
   0x2   :  { %s892_s15 = smov 0   ;;  %s894_s16 = smov 0  }
   0x3   :  { %s896_s17 = smov 0   ;;  %s898_s18 = smov 0  }
   0x4   :  { %s900_s19 = smov 0   ;;  %s902_s20 = smov 0  }
   0x5   :  { %s904_s21 = smov 0   ;;  %s906_s22 = smov 0  }
   0x6   :  { %s908_s23 = smov 0  }
   0x7 LB: > { %s655_s24 = sadd.s32 4294967295, %s862_s23   ;;  %s24_s25 = sadd.s32 1, %s854_s21  ;;  %s862_s23 = sphi %s908_s23, %s15_s23   ;;  %s858_s22 = sphi %s906_s22, %s1072_s22   ;;  %s854_s21 = sphi %s904_s21, %s1071_s21   ;;  %s850_s20 = sphi %s902_s20, %s1070_s20   ;;  %s846_s19 = sphi %s900_s19, %s1069_s19   ;;  %s842_s18 = sphi %s898_s18, %s1068_s18   ;;  %s838_s17 = sphi %s896_s17, %s1067_s17   ;;  %s834_s16 = sphi %s894_s16, %s1066_s16   ;;  %s830_s15 = sphi %s892_s15, %s1065_s15  }
   0x8   : > { %p25_p0 = scmp.ge.s32.totalorder %s24_s25, 3  ;;  %s27_s26 = sadd.s32 1, %s858_s22 }
   0x9   : > { %s60_s27 = sadd.s32 1, %s842_s18  ;;  %p67_p1 = scmp.ne.s32.totalorder %s842_s18, %s838_s17 }
   0xa   : > { %s1074_s25 = smov (%p25_p0, %s24_s25), 0  ;;  %s1076_s26 = smov (!%p25_p0, %s27_s26), %s858_s22 }
   0xb   : > { %s57_s28 = ssub.s32 %s854_s21, %s1074_s25  ;;  %p68_p2 = scmp.eq.s32.totalorder %s862_s23, 0 }
   0xc   : > { %p29_p3 = scmp.ge.s32.totalorder %s1076_s26, 2  ;;  %p58_p4 = scmp.eq.s32.totalorder %s57_s28, 0 }
   0xd   : > { %p69_p5 = por %p68_p2, %p67_p1  ;;  %s114_s29 = sadd.s32 1, %s834_s16 }
   0xe   : > { %s1078_s26 = smov (%p29_p3, %s1076_s26), 0  ;;  %p124_p6 = scmp.ne.s32.totalorder %s834_s16, %s830_s15 }
   0xf   : > { %1061 = sst [smem:[#allocation6_spill]] %s1078_s26  ;;  %s109_s5 = ssub.s32 %s858_s22, %s1078_s26 }
  0x10   : > { %s953_s30 = scalar_select %p58_p4, %s842_s18, %s60_s27  }
  0x11   : > { %s111_s6 = sor.u32 %s109_s5, %s57_s28  ;;  %p125_p7 = scmp.eq.s32.totalorder %s655_s24, 5 }
  0x12   : > { %p112_p8 = scmp.eq.s32.totalorder %s111_s6, 0  ;;  %p658_p10 = scmp.ge.s32.totalorder %s862_s23, 6 }
  0x13   : > { %p959_p9 = por %p125_p7, %p124_p6 }
  0x14   : > { %s964_s8 = scalar_select %p112_p8, %s834_s16, %s114_s29  }
  0x15   : > { %173 = sbr.rel (%p658_p10) target bundleno = 40 (0x28), region = 16 }
  0x1a   : > { %185 = sbr.rel (!%p69_p5) target bundleno = 40 (0x28), region = 24  ;;  %s187_s9 = sand.u32 (%p69_p5), 1, %s842_s18  }
  0x1b   : > { %s659_s10 = sshll.u32 (%p69_p5), %s854_s21, 3  ;;  %s700_s11 = smul.u32 (%p69_p5), 48, %s187_s9 }
  0x1c   : > { %s1063_s1 = sld [smem:[#allocation7_spill]] (%p69_p5) }
  0x1d   : > { %s189_s24 = scalar_lea.vmem (%p69_p5), [#allocation4], %s700_s11 }
  0x22   : > { %s191_s14 = scalar_lea.vmem %s1063_s1, %s659_s10 }
  0x23   : > { %v230_v0 = vld [vmem:[%s191_s14] sm:$0xff]  ;;  %v232_v1 = vld [vmem:[%s191_s14 + $0x18] sm:$0xff]  ;;  %v234_v2 = vld [vmem:[%s191_s14 + $0x30] sm:$0xff] }
  0x24   : > { %v236_v3 = vld [vmem:[%s191_s14 + $0x48] sm:$0xff]  ;;  %v238_v4 = vld [vmem:[%s191_s14 + $0x60] sm:$0xff]  ;;  %v240_v5 = vld [vmem:[%s191_s14 + $0x78] sm:$0xff]  ;;  %231 = vst [vmem:[%s189_s24] sm:$0xff] %v230_v0 }
  0x25   : > { %233 = vst [vmem:[%s189_s24 + $0x8] sm:$0xff] %v232_v1  ;;  %235 = vst [vmem:[%s189_s24 + $0x10] sm:$0xff] %v234_v2 }
  0x26   : > { %237 = vst [vmem:[%s189_s24 + $0x18] sm:$0xff] %v236_v3  ;;  %239 = vst [vmem:[%s189_s24 + $0x20] sm:$0xff] %v238_v4 }
  0x27   : > { %241 = vst [vmem:[%s189_s24 + $0x28] sm:$0xff] %v240_v5 }
  0x28 PF: > { %p660_p11 = scmp.ge.s32.totalorder %s862_s23, 1  ;;  %p252_p12 = scmp.lt.s32.totalorder %s862_s23, 7 }
  0x2a   : > { %p253_p13 = pnand %p660_p11, %p252_p12 }
  0x2b   : > { %s259_s27 = sand.u32 (!%p253_p13), 1, %s838_s17   ;;  %s286_s28 = sand.u32 (!%p253_p13), 1, %s830_s15  }
  0x2c   : > { %256 = sbr.rel (%p253_p13) target bundleno = 729 (0x2d9), region = 66  ;;  %s661_s5 = sshll.u32 (!%p253_p13), %s286_s28, 4 }
  0x2d   : > { %s701_s29 = smul.u32 (!%p253_p13), 48, %s259_s27  ;;  %s662_s6 = sshll.u32 (!%p253_p13), %s850_s20, 1 }
  0x2e   : > { %p297_p0 = scmp.lt.s32.totalorder (!%p253_p13), %s662_s6, 3  ;;  %p302_p1 = scmp.lt.s32.totalorder (!%p253_p13), %s846_s19, 2 }
  0x2f   : > { %s261_s1 = scalar_lea.vmem (!%p253_p13), [#allocation4], %s701_s29  ;;  %s995_s26 = scalar_lea.vmem (!%p253_p13), [#allocation5], %s661_s5 }
  0x30   : > { %p666_p2 = scmp.ne.s32.totalorder (!%p253_p13), %s846_s19, 0 }
  0x31   : > { %s1080_s6 = smov (!%p297_p0, %s662_s6), 3 }
  0x32   : > { %s979_s9 = scalar_select %p302_p1, %s846_s19, 2 }
  0x33   : > { %s663_s10 = sshll.u32 %s1080_s6, 3  ;;  %315 = sbr.rel (%p666_p2) target bundleno = 59 (0x3b), region = 74 }
  0x34   : > { %s984_s13 = scalar_lea.vmem %s1054_s0, %s663_s10  ;;  %s304_s17 = scalar_lea.vmem %s1056_s2, %s979_s9 }
  0x35   : > { %s993_s28 = scalar_lea.vmem %s1058_s4, %s663_s10 }
  0x38   : > { %vm316_vm0 = vcmask 7168   ;;  %v864_v6 = vmov -inf   ;;  %v865_v7 = vmov 0.0  }
  0x39   : > { %317 = vst.msk [vmem:[#allocation2] sm:$0xff] %vm316_vm0, %v864_v6  ;;  %318 = vst.msk [vmem:[#allocation2 + $0x8] sm:$0xff] %vm316_vm0, %v864_v6 }
  0x3a   : > { %319 = vst.msk [vmem:[#allocation3] sm:$0xff] %vm316_vm0, %v865_v7  ;;  %320 = vst.msk [vmem:[#allocation3 + $0x8] sm:$0xff] %vm316_vm0, %v865_v7 }
  0x3b PF: > { %v328_v8 = vld [vmem:[%s261_s1 + $0x28] sm:$0xff]  ;;  %v327_v9 = vld [vmem:[%s261_s1 + $0x20] sm:$0xff]  ;;  %vm336_vm1 = vcmask 392192   ;;  %v326_v10 = vld [vmem:[%s261_s1 + $0x18] sm:$0xff]  ;;  %v866_v21 = vmov 0   ;;  %vm458_vm2 = vcmask 7168  }
  0x3c   : > { %685 = vmatprep.subr.mxu0 %v328_v8  ;;  %v321_v11 = vld [vmem:[%s984_s13] sm:$0xff]  ;;  %v324_v13 = vld [vmem:[%s261_s1 + $0x8] sm:$0xff]  ;;  %778 = vset.pattern.permute.xlu1 %v866_v21  ;;  %p670_p3 = scmp.ne.s32.totalorder %s846_s19, 2 }
  0x3d   : > { %686 = vmatpush3.msra.mxu0 %v328_v8  ;;  %697 = vmatprep.mubr.msk.f32.mxu0 %vm336_vm1, %v321_v11  ;;  %v325_v12 = vld [vmem:[%s261_s1 + $0x10] sm:$0xff]  ;;  %v323_v14 = vld [vmem:[%s261_s1] sm:$0xff]  ;;  %v322_v15 = vld [vmem:[%s984_s13 + $0x8] sm:$0xff] }
  0x3e   : > { %687 = vmatprep.subr.mxu0 %v327_v9  ;;  %v667_v16 = vld [vmem:[%s304_s17] ss:$0 sm:$0xff]  ;;  %779 = vset.pattern.permute.xlu0 %v866_v21 }
  0x3f   : > { %688 = vmatpush3.msra.mxu0 %v327_v9 }
  0x40   : > { %689 = vmatprep.subr.mxu0 %v326_v10  ;;  %v418_v22 = vld [vmem:[#allocation2] sm:$0xff]  ;;  %v419_v25 = vld [vmem:[#allocation2 + $0x8] sm:$0xff] }
  0x41   : > { %690 = vmatpush3.msra.mxu0 %v326_v10  ;;  %v432_v41 = vld [vmem:[#allocation3] sm:$0xff]  ;;  %v433_v45 = vld [vmem:[#allocation3 + $0x8] sm:$0xff] }
  0x42   : > { %691 = vmatprep.subr.mxu0 %v325_v12 }
  0x43   : > { %692 = vmatpush3.msra.mxu0 %v325_v12 }
  0x44   : > { %693 = vmatprep.subr.mxu0 %v324_v13 }
  0x45   : > { %694 = vmatpush3.msra.mxu0 %v324_v13 }
  0x46   : > { %695 = vmatprep.subr.mxu0 %v323_v14 }
  0x47   : > { %696 = vmatpush3.msra.mxu0 %v323_v14 }
  0x48   : > { %698 = vmatmul.mubr.msk.f32.vlgmr.msra.gmra.mxu0 %vm336_vm1, %v322_v15 }
 0x108   : > { %v699_v17 = vpop.f32.mrf.mxu0 }
 0x109   : > { %v415_v18 = vadd.f32 %v699_v17, %v667_v16 }
 0x10a   : > { %v409_v19 = vpop.f32.mrf.mxu0 }
 0x10b   : > { %464 = vst [vmem:[%s995_s26 + $0x8] sm:$0xff] %v415_v18  ;;  %v410_v20 = vadd.f32 %v667_v16, %v409_v19 }
 0x10d   : > { %463 = vst [vmem:[%s995_s26] sm:$0xff] %v410_v20  ;;  %420 = vmax.xlane.f32.xlu0 %v410_v20 }
 0x111   : > { %422 = vmax.xlane.f32.xlu0 %v415_v18 }
 0x196   : > { %v421_v23 = vpop.xlane.xlu0 %420 }
 0x197   : > { %v424_v24 = vmax.f32 %v418_v22, %v421_v23 }
 0x199   : > { %v426_v26 = vsub.f32 %v418_v22, %v424_v24  ;;  %461 = vst.msk [vmem:[#allocation2] sm:$0xff] %vm458_vm2, %v424_v24  ;;  %438 = vperm.xlu1 %778, %v424_v24  }
 0x19a   : > { %v423_v27 = vpop.xlane.xlu0 %422 }
 0x19b   : > { %v425_v28 = vmax.f32 %v419_v25, %v423_v27  ;;  %v428_v38 = vmul.f32 1.442695, %v426_v26 }
 0x19d   : > { %v427_v29 = vsub.f32 %v419_v25, %v425_v28  ;;  %462 = vst.msk [vmem:[#allocation2 + $0x8] sm:$0xff] %vm458_vm2, %v425_v28  ;;  %443 = vperm.xlu1 %778, %v425_v28  }
 0x19f   : > { %v430_v39 = vmul.f32 1.442695, %v427_v29 }
 0x214   : > { %v439_v30 = vpop.permute.xlu1 %438 }
 0x215   : > { %v446_v31 = vsub.f32 %v410_v20, %v439_v30 }
 0x217   : > { %v448_v32 = vmul.f32 1.442695, %v446_v31 }
 0x218   : > { %v444_v33 = vpop.permute.xlu1 %443 }
 0x219   : > { %780 = vpow2.f32 %v448_v32  ;;  %v447_v34 = vsub.f32 %v415_v18, %v444_v33 }
 0x21b   : > { %v450_v35 = vmul.f32 1.442695, %v447_v34 }
 0x21d   : > { %782 = vpow2.f32 %v450_v35 }
 0x21e   : > { %784 = vpow2.f32 %v428_v38 }
 0x21f   : > { %786 = vpow2.f32 %v430_v39 }
 0x226   : > { %v781_v36 = vpop.eup %780 }
 0x227   : > { %452 = vadd.xlane.f32.xlu0 %v781_v36 }
 0x22a   : > { %v783_v37 = vpop.eup %782 }
 0x22b   : > { %454 = vadd.xlane.f32.xlu1 %v783_v37  ;;  %v785_v40 = vpop.eup %784 }
 0x22c   : > { %v434_v42 = vmul.f32 %v785_v40, %v432_v41  ;;  %v787_v43 = vpop.eup %786 }
 0x22d   : > { %v435_v47 = vmul.f32 %v787_v43, %v433_v45 }
 0x2b0   : > { %v453_v44 = vpop.xlane.xlu0 %452 }
 0x2b1   : > { %v456_v46 = vadd.f32 %v453_v44, %v434_v42 }
 0x2b3   : > { %459 = vst.msk [vmem:[#allocation3] sm:$0xff] %vm458_vm2, %v456_v46  ;;  %468 = sbr.rel (%p670_p3) target bundleno = 722 (0x2d2), region = 78 }
 0x2b4   : > { %v455_v48 = vpop.xlane.xlu1 %454 }
 0x2b5   : > { %v457_v49 = vadd.f32 %v455_v48, %v435_v47 }
 0x2b7   : > { %460 = vst.msk [vmem:[#allocation3 + $0x8] sm:$0xff] %vm458_vm2, %v457_v49 }
 0x2b8   : > { %v469_v53 = vld [vmem:[#allocation2] sm:$0xff]  ;;  %v470_v56 = vld [vmem:[#allocation2 + $0x8] sm:$0xff] }
 0x2ba   : > { %v471_v50 = vld [vmem:[#allocation3] sm:$0xff] }
 0x2bb   : > { %788 = vlog2.f32 %v471_v50 }
 0x2be   : > { %v472_v51 = vld [vmem:[#allocation3 + $0x8] sm:$0xff] }
 0x2bf   : > { %790 = vlog2.f32 %v472_v51 }
 0x2c8   : > { %v789_v52 = vpop.eup %788 }
 0x2c9   : > { %v474_v55 = vmul.f32 0.6931472, %v789_v52 }
 0x2cb   : > { %v477_v58 = vadd.f32 %v474_v55, %v469_v53 }
 0x2cc   : > { %v791_v54 = vpop.eup %790 }
 0x2cd   : > { %v476_v57 = vmul.f32 0.6931472, %v791_v54  ;;  %479 = vst.msk [vmem:[%s993_s28] sm:$0xff] %vm458_vm2, %v477_v58 }
 0x2cf   : > { %v478_v59 = vadd.f32 %v476_v57, %v470_v56 }
 0x2d1   : > { %480 = vst.msk [vmem:[%s993_s28 + $0x8] sm:$0xff] %vm458_vm2, %v478_v59 }
 0x2d2 PF: > { %492 = sbr.rel (!%p959_p9) target bundleno = 729 (0x2d9), region = 82  ;;  %v528_v60 = vld [vmem:[%s995_s26] sm:$0xff] (%p959_p9)  ;;  %v530_v61 = vld [vmem:[%s995_s26 + $0x8] sm:$0xff] (%p959_p9) }
 0x2d3   : > { %s702_s1 = smul.u32 (%p959_p9), 6, %s850_s20 }
 0x2d5   : > { %s495_s6 = sadd.s32 (%p959_p9), %s846_s19, %s702_s1 }
 0x2d6   : > { %s674_s9 = sshll.u32 (%p959_p9), %s495_s6, 3 }
 0x2d7   : > { %s497_s12 = scalar_lea.vmem %s1057_s3, %s674_s9 }
 0x2d8   : > { %529 = vst [vmem:[%s497_s12] sm:$0xff] %v528_v60  ;;  %531 = vst [vmem:[%s497_s12 + $0x18] sm:$0xff] %v530_v61 }
 0x2d9 PF: > { %s15_s23 = sadd.s32 1, %s862_s23   ;;  %s1064_s26 = sld [smem:[#allocation6_spill]] }
 0x2da   : > { %p12_p4 = scmp.ge.s32.totalorder %s15_s23, 8   ;;  %s1065_s15 = smov %s834_s16 }
 0x2db   : > { %s1066_s16 = smov %s964_s8  ;;  %s1067_s17 = smov %s842_s18 }
 0x2dc   : > { %s1068_s18 = smov %s953_s30  ;;  %s1069_s19 = smov %s854_s21 }
 0x2dd   : > { %s1070_s20 = smov %s858_s22  ;;  %s1071_s21 = smov %s1074_s25 }
 0x2de   :  { %14 = sbr.rel (!%p12_p4) target bundleno = 7 (0x7), region = 169 }
 0x2df   : > { %s1072_s22 = smov %s1064_s26 }

</bundles_post_ra>
